<compile_context>
chip_gen: v7x
topology: tpu7x:2x2x1
jax: 0.10.0
libtpu: 0.0.40
codegen_flags: <defaults>
</compile_context>

<pallas_src>
import functools

import jax
import jax.numpy as jnp
from jax.experimental import pallas as pl
from jax.experimental.pallas import tpu as pltpu


# ---------------------------------------------------------------------------
# Fused Pallas kernel
#   grid = (C_out // Cb, L // Lq)
#   axis 0 ("parallel")  : block of Cb output channels
#   axis 1 ("arbitrary") : tile of Lq query rows (columns of the transposed out)
# ---------------------------------------------------------------------------
def _fused_kernel(w_ref, b_ref, x_ref, att_ref, inv_nz_ref, out_ref, y_scr):
    # w_ref:      SMEM (C_out*C_in,)      conv weights (flat, row-major)
    # b_ref:      SMEM (C_out,)           conv bias
    # x_ref:      VMEM (C_in, PP, L)      input in (transposed) patch layout, resident
    # att_ref:    VMEM (Cb, L, Lq) bf16   attention^T block (keys x queries)
    # inv_nz_ref: VMEM (Cb, 1, Lq) f32    1 / (count_nonzero + 1e-5) per query row
    # out_ref:    VMEM (Cb, PP, Lq) f32   corrected output (transposed patch layout)
    # y_scr:      VMEM (Cb, PP, L)  f32   conv result, persists across q tiles
    cb = out_ref.shape[0]
    c_in = x_ref.shape[0]
    lq = out_ref.shape[2]
    full_q = out_ref.shape[2] == y_scr.shape[2]     # static: single q tile?
    cblk = pl.program_id(0)
    qblk = pl.program_id(1)

    # Compute the pointwise conv once per channel block (q == 0), keep it in
    # VMEM scratch for the remaining q tiles.  Channel mix = C_in scalar*tile
    # FMAs on the VPU (tree-reduced for ILP); the MXU is reserved for the big
    # (PP, L) @ (L, Lq) attention matmul below.
    @pl.when(qblk == 0)
    def _():
        x = x_ref[...]                               # (C_in, PP, L) f32
        for c in range(cb):                          # static unroll over block
            ch = cblk * cb + c                       # global output channel
            terms = [x[i] * w_ref[ch * c_in + i] for i in range(c_in)]
            while len(terms) > 1:                    # tree reduce (ILP)
                nxt = []
                for j in range(0, len(terms) - 1, 2):
                    nxt.append(terms[j] + terms[j + 1])
                if len(terms) % 2:
                    nxt.append(terms[-1])
                terms = nxt
            y_scr[c] = terms[0] + b_ref[ch]          # (PP, L) f32

    for c in range(cb):                              # static unroll over block
        y = y_scr[c]                                 # (PP, L) f32
        att_t = att_ref[c]                           # (L, Lq) bf16 (= att^T slice)

        # corr^T = y^T @ att^T ; lane axis of the result is the query axis (Lq).
        corr = jnp.dot(y.astype(jnp.bfloat16), att_t,
                       preferred_element_type=jnp.float32)      # (PP, Lq) f32
        corr = corr * inv_nz_ref[c]                  # exact 1/nz, precomputed (1, Lq)

        if full_q:
            yq = y                                   # (PP, L) == (PP, Lq)
        else:
            q0 = pl.multiple_of(qblk * lq, lq)
            yq = y_scr[c, :, pl.ds(q0, lq)]          # (PP, Lq) f32

        z = corr * yq + yq
        out_ref[c] = jnp.where(z >= 0.0, z, 0.2 * z)             # LeakyReLU(0.2)


# ---------------------------------------------------------------------------
# JAX glue: non-overlapping unfold / fold in the lane-dense (C, PP, L) layout
# (matches nn.Unfold/Fold ordering: patch-row index = kh*P + kw,
#  patch-column index = ph*gw + pw)
# ---------------------------------------------------------------------------
def unfold_nonoverlap(img, P):
    # img: (C, Hh, Ww) -> (C, P*P, L)
    C, Hh, Ww = img.shape
    gh, gw = Hh // P, Ww // P
    t = img.reshape(C, gh, P, gw, P)
    t = t.transpose(0, 2, 4, 1, 3)            # (C, kh, kw, ph, pw)
    return t.reshape(C, P * P, gh * gw)       # (C, PP, L)


def fold_nonoverlap(pat, P, Hh, Ww):
    # pat: (C, P*P, L) -> (C, Hh, Ww)
    C = pat.shape[0]
    gh, gw = Hh // P, Ww // P
    t = pat.reshape(C, P, P, gh, gw)          # (C, kh, kw, ph, pw)
    t = t.transpose(0, 3, 1, 4, 2)            # (C, ph, kh, pw, kw)
    return t.reshape(C, Hh, Ww)


# ---------------------------------------------------------------------------
# Tiling helpers
# ---------------------------------------------------------------------------
def _pad(n, m):
    return ((n + m - 1) // m) * m


def _choose_lq(L, cap=512):
    # Largest multiple-of-128 divisor of L not exceeding cap; full L if L is
    # small or not 128-divisible (single q tile).
    if L % 128 != 0 or L <= cap:
        return L
    best = 128
    for q in range(128, cap + 1, 128):
        if L % q == 0:
            best = q
    return best


def _choose_cb(c_out, fits):
    divs = [d for d in range(1, c_out + 1) if c_out % d == 0]
    fitting = [d for d in divs if fits(d)]
    if not fitting:
        return 1
    # Prefer an even number of channel-block steps (>=2) so the "parallel"
    # axis splits across both v7x TensorCores.
    even = [d for d in fitting if (c_out // d) % 2 == 0]
    multi = [d for d in fitting if (c_out // d) >= 2]
    pool = even or multi or fitting
    return max(pool)


# ---------------------------------------------------------------------------
# Forward pass (fused Pallas path)
# ---------------------------------------------------------------------------
@functools.partial(jax.jit, static_argnames=("patch_size", "channel_block"))
def cross_head_bak_forward(x, attentions, w_img, b_img, patch_size,
                           channel_block=None):
    N, C_in, D, H, W = x.shape
    assert N == 1, "forward reshapes batch into 1, so N must be 1"
    C_out = w_img.shape[0]
    Hh, Ww = D, H * W
    P = patch_size

    # Unfold BEFORE the conv (pointwise conv commutes with the permutation);
    # keep the long patch-index axis L on lanes.
    # TODO(synk): x_pat is held resident in VMEM; for very large C_in*D*H*W it
    # would itself need a grid axis.
    x_img = x.reshape(C_in, Hh, Ww).astype(jnp.float32)
    x_pat = unfold_nonoverlap(x_img, P)                      # (C_in, PP, L)
    PP, L = x_pat.shape[1], x_pat.shape[2]

    att_f32 = attentions.reshape(C_out, L, L).astype(jnp.float32)
    # nonzero count from the f32 attentions (before the bf16 cast), exact 1/nz.
    nz = jnp.sum((att_f32 != 0.0).astype(jnp.float32), axis=-1) + 1e-5   # (C_out, L)
    inv_nz = (1.0 / nz).reshape(C_out, 1, L)
    att_t = jnp.swapaxes(att_f32, -1, -2).astype(jnp.bfloat16)           # (C_out, Lk, Lq)

    Lq = _choose_lq(L)
    n_q = L // Lq

    # Generation-aware VMEM budget (v5e/v6e: 128 MiB, v7x: 64 MiB per TC).
    try:
        info = pltpu.get_tpu_info()
        vmem_cap = int(getattr(info, "vmem_capacity_bytes", 64 << 20))
    except Exception:  # pragma: no cover - defensive
        vmem_cap = 64 << 20
    budget = int(0.7 * vmem_cap)

    def _blk_bytes(cb):
        att_b = 2 * cb * _pad(L, 16) * _pad(Lq, 128) * 2     # bf16, double-buffered
        out_b = 2 * cb * _pad(PP, 8) * _pad(Lq, 128) * 4     # f32, double-buffered
        inz_b = 2 * cb * 8 * _pad(Lq, 128) * 4               # f32, double-buffered
        x_b = C_in * _pad(PP, 8) * _pad(L, 128) * 4          # grid-invariant, single
        y_b = cb * _pad(PP, 8) * _pad(L, 128) * 4            # scratch
        return att_b + out_b + inz_b + x_b + y_b

    if channel_block is not None:
        Cb = channel_block
        assert C_out % Cb == 0
    else:
        Cb = _choose_cb(C_out, lambda d: _blk_bytes(d) <= budget)

    vmem_limit = int(min(max(int(1.5 * _blk_bytes(Cb)) + (4 << 20), 16 << 20),
                         budget))

    grid = (C_out // Cb, n_q)

    out_pat = pl.pallas_call(
        _fused_kernel,
        out_shape=jax.ShapeDtypeStruct((C_out, PP, L), jnp.float32),
        grid=grid,
        in_specs=[
            pl.BlockSpec(memory_space=pltpu.MemorySpace.SMEM),      # w flat
            pl.BlockSpec(memory_space=pltpu.MemorySpace.SMEM),      # b
            pl.BlockSpec((C_in, PP, L), lambda c, q: (0, 0, 0)),    # x_pat (resident)
            pl.BlockSpec((Cb, L, Lq), lambda c, q: (c, 0, q)),      # att^T block
            pl.BlockSpec((Cb, 1, Lq), lambda c, q: (c, 0, q)),      # 1/nz block
        ],
        out_specs=pl.BlockSpec((Cb, PP, Lq), lambda c, q: (c, 0, q)),
        scratch_shapes=[pltpu.VMEM((Cb, PP, L), jnp.float32)],      # conv result y
        compiler_params=pltpu.CompilerParams(
            dimension_semantics=("parallel", "arbitrary"),
            vmem_limit_bytes=vmem_limit,
        ),
    )(w_img.reshape(-1).astype(jnp.float32),
      b_img.astype(jnp.float32),
      x_pat, att_t, inv_nz)

    out_img = fold_nonoverlap(out_pat, P, Hh, Ww)                   # (C_out, Hh, Ww)
    return out_img.reshape(1, C_out, Hh, Ww)


# ---------------------------------------------------------------------------
# Pure-JAX reference (mirrors the PyTorch forward literally, f32, exact division)
# ---------------------------------------------------------------------------
def ref_forward(x, attentions, w_img, b_img, patch_size):
    N, C_in, D, H, W = x.shape
    C_out = w_img.shape[0]
    y = jnp.einsum("oi,nidhw->nodhw", w_img, x) + b_img[None, :, None, None, None]
    y = y.reshape(1, C_out, D, H * W)
    Hh, Ww = D, H * W
    outs = []
    for i in range(C_out):
        att_i = attentions[0, i]                                        # (L, L)
        nz = jnp.sum((att_i != 0).astype(jnp.float32), -1, keepdims=True) + 1e-5
        pat_i = unfold_nonoverlap(y[0, i:i + 1], patch_size)[0]         # (PP, L)
        corr_pat = (att_i / nz) @ pat_i.T                               # (L, PP)
        corr_img = fold_nonoverlap(corr_pat.T[None], patch_size, Hh, Ww)[0]
        outs.append(corr_img)
    corr = jnp.stack(outs)[None]                                        # (1, C_out, Hh, Ww)
    z = corr * y + y
    return jnp.where(z >= 0.0, z, 0.2 * z)


# ---------------------------------------------------------------------------
if __name__ == "__main__":
    in_dim, out_dim, patch_size = 4, 8, 3
    N, D, H, W = 1, 6, 4, 6                           # unfold image (D, H*W) = (6, 24)
    L = (D // patch_size) * ((H * W) // patch_size)   # 2 * 8 = 16

    key = jax.random.PRNGKey(0)
    k_x, k_att, k_w1, k_b1, k_w2, k_b2 = jax.random.split(key, 6)

    x = jax.random.normal(k_x, (N, in_dim, D, H, W), dtype=jnp.float32)
    # sparse-ish attentions so count_nonzero is exercised
    attentions = jax.nn.relu(
        jax.random.normal(k_att, (N, out_dim, L, L), dtype=jnp.float32)
    )

    # conv_img params (Conv3d 1x1x1 == pointwise channel mix)
    w_img = 0.1 * jax.random.normal(k_w1, (out_dim, in_dim), dtype=jnp.float32)
    b_img = 0.1 * jax.random.normal(k_b1, (out_dim,), dtype=jnp.float32)
    # conv_feamap params exist in __init__ but are unused in forward (kept for parity)
    w_feamap = 0.1 * jax.random.normal(k_w2, (out_dim, in_dim), dtype=jnp.float32)
    b_feamap = 0.1 * jax.random.normal(k_b2, (out_dim,), dtype=jnp.float32)

    out = cross_head_bak_forward(x, attentions, w_img, b_img, patch_size)
    out = jax.block_until_ready(out)

    ref = ref_forward(x, attentions, w_img, b_img, patch_size)
    assert out.shape == (1, out_dim, D, H * W)
    # tolerance covers the bf16 attention / bf16 matmul operands vs the f32 ref
    err = float(jnp.max(jnp.abs(out - ref)))
    assert jnp.allclose(out, ref, atol=1e-2, rtol=1e-2), f"max abs err = {err}"

    print("KERNEL_OK")
</pallas_src>

<mosaic_0001>
module attributes {stable_mosaic.version = 11 : i64} {
  func.func @_fused_kernel(%arg0: i32, %arg1: i32, %arg2: memref<32xf32, #tpu.memory_space<smem>>, %arg3: memref<8xf32, #tpu.memory_space<smem>>, %arg4: memref<4x9x16xf32, #tpu.memory_space<vmem>>, %arg5: memref<4x16x16xbf16, #tpu.memory_space<vmem>>, %arg6: memref<4x1x16xf32, #tpu.memory_space<vmem>>, %arg7: memref<4x9x16xf32, #tpu.memory_space<vmem>>, %arg8: memref<4x9x16xf32, #tpu.memory_space<vmem>>) attributes {dimension_semantics = [#tpu.dimension_semantics<parallel>, #tpu.dimension_semantics<arbitrary>], iteration_bounds = array<i64: 2, 1>, scalar_prefetch = 0 : i64, scratch_operands = 1 : i64, tpu.core_type = #tpu.core_type<tc>, window_params = [{transform_indices = @transform_0, window_bounds = array<i64: 32>}, {transform_indices = @transform_1, window_bounds = array<i64: 8>}, {pipeline_mode = #tpu.pipeline_mode<synchronous>, transform_indices = @transform_2, window_bounds = array<i64: 4, 9, 16>}, {transform_indices = @transform_3, window_bounds = array<i64: 4, 16, 16>}, {transform_indices = @transform_4, window_bounds = array<i64: 4, 1, 16>}, {transform_indices = @transform_5, window_bounds = array<i64: 4, 9, 16>}]} {
    %c0_i32 = arith.constant 0 : i32
    %0 = arith.cmpi eq, %arg1, %c0_i32 : i32
    %1 = arith.extui %0 : i1 to i32
    %c0_i32_0 = arith.constant 0 : i32
    %2 = arith.cmpi ne, %1, %c0_i32_0 : i32
    scf.if %2 {
      %c0_56 = arith.constant 0 : index
      %c0_57 = arith.constant 0 : index
      %c0_58 = arith.constant 0 : index
      %83 = vector.load %arg4[%c0_56, %c0_57, %c0_58] : memref<4x9x16xf32, #tpu.memory_space<vmem>>, vector<4x9x16xf32>
      %c4_i32 = arith.constant 4 : i32
      %84 = arith.muli %arg0, %c4_i32 : i32
      %c0_i32_59 = arith.constant 0 : i32
      %85 = arith.addi %84, %c0_i32_59 : i32
      %86 = vector.extract_strided_slice %83 {offsets = [0, 0, 0], sizes = [1, 9, 16], strides = [1, 1, 1]} : vector<4x9x16xf32> to vector<1x9x16xf32>
      %87 = vector.shape_cast %86 : vector<1x9x16xf32> to vector<9x16xf32>
      %c4_i32_60 = arith.constant 4 : i32
      %88 = arith.muli %85, %c4_i32_60 : i32
      %c0_i32_61 = arith.constant 0 : i32
      %89 = arith.addi %88, %c0_i32_61 : i32
      %90 = arith.index_cast %89 : i32 to index
      %91 = memref.load %arg2[%90] : memref<32xf32, #tpu.memory_space<smem>>
      %92 = vector.broadcast %91 : f32 to vector<9x16xf32>
      %93 = arith.mulf %87, %92 : vector<9x16xf32>
      %94 = vector.extract_strided_slice %83 {offsets = [1, 0, 0], sizes = [1, 9, 16], strides = [1, 1, 1]} : vector<4x9x16xf32> to vector<1x9x16xf32>
      %95 = vector.shape_cast %94 : vector<1x9x16xf32> to vector<9x16xf32>
      %c4_i32_62 = arith.constant 4 : i32
      %96 = arith.muli %85, %c4_i32_62 : i32
      %c1_i32 = arith.constant 1 : i32
      %97 = arith.addi %96, %c1_i32 : i32
      %98 = arith.index_cast %97 : i32 to index
      %99 = memref.load %arg2[%98] : memref<32xf32, #tpu.memory_space<smem>>
      %100 = vector.broadcast %99 : f32 to vector<9x16xf32>
      %101 = arith.mulf %95, %100 : vector<9x16xf32>
      %102 = vector.extract_strided_slice %83 {offsets = [2, 0, 0], sizes = [1, 9, 16], strides = [1, 1, 1]} : vector<4x9x16xf32> to vector<1x9x16xf32>
      %103 = vector.shape_cast %102 : vector<1x9x16xf32> to vector<9x16xf32>
      %c4_i32_63 = arith.constant 4 : i32
      %104 = arith.muli %85, %c4_i32_63 : i32
      %c2_i32 = arith.constant 2 : i32
      %105 = arith.addi %104, %c2_i32 : i32
      %106 = arith.index_cast %105 : i32 to index
      %107 = memref.load %arg2[%106] : memref<32xf32, #tpu.memory_space<smem>>
      %108 = vector.broadcast %107 : f32 to vector<9x16xf32>
      %109 = arith.mulf %103, %108 : vector<9x16xf32>
      %110 = vector.extract_strided_slice %83 {offsets = [3, 0, 0], sizes = [1, 9, 16], strides = [1, 1, 1]} : vector<4x9x16xf32> to vector<1x9x16xf32>
      %111 = vector.shape_cast %110 : vector<1x9x16xf32> to vector<9x16xf32>
      %c4_i32_64 = arith.constant 4 : i32
      %112 = arith.muli %85, %c4_i32_64 : i32
      %c3_i32 = arith.constant 3 : i32
      %113 = arith.addi %112, %c3_i32 : i32
      %114 = arith.index_cast %113 : i32 to index
      %115 = memref.load %arg2[%114] : memref<32xf32, #tpu.memory_space<smem>>
      %116 = vector.broadcast %115 : f32 to vector<9x16xf32>
      %117 = arith.mulf %111, %116 : vector<9x16xf32>
      %118 = arith.addf %93, %101 : vector<9x16xf32>
      %119 = arith.addf %109, %117 : vector<9x16xf32>
      %120 = arith.addf %118, %119 : vector<9x16xf32>
      %121 = arith.index_cast %85 : i32 to index
      %122 = memref.load %arg3[%121] : memref<8xf32, #tpu.memory_space<smem>>
      %123 = vector.broadcast %122 : f32 to vector<9x16xf32>
      %124 = arith.addf %120, %123 : vector<9x16xf32>
      %c0_65 = arith.constant 0 : index
      %c0_66 = arith.constant 0 : index
      %c0_67 = arith.constant 0 : index
      %125 = vector.load %arg8[%c0_65, %c0_66, %c0_67] : memref<4x9x16xf32, #tpu.memory_space<vmem>>, vector<1x9x16xf32>
      %126 = vector.shape_cast %125 : vector<1x9x16xf32> to vector<9x16xf32>
      %127 = vector.shape_cast %124 : vector<9x16xf32> to vector<1x9x16xf32>
      tpu.vector_store %arg8[%c0_65, %c0_66, %c0_67], %127 {strides = array<i32>} : memref<4x9x16xf32, #tpu.memory_space<vmem>>, vector<1x9x16xf32>,
      %c4_i32_68 = arith.constant 4 : i32
      %128 = arith.muli %arg0, %c4_i32_68 : i32
      %c1_i32_69 = arith.constant 1 : i32
      %129 = arith.addi %128, %c1_i32_69 : i32
      %130 = vector.extract_strided_slice %83 {offsets = [0, 0, 0], sizes = [1, 9, 16], strides = [1, 1, 1]} : vector<4x9x16xf32> to vector<1x9x16xf32>
      %131 = vector.shape_cast %130 : vector<1x9x16xf32> to vector<9x16xf32>
      %c4_i32_70 = arith.constant 4 : i32
      %132 = arith.muli %129, %c4_i32_70 : i32
      %c0_i32_71 = arith.constant 0 : i32
      %133 = arith.addi %132, %c0_i32_71 : i32
      %134 = arith.index_cast %133 : i32 to index
      %135 = memref.load %arg2[%134] : memref<32xf32, #tpu.memory_space<smem>>
      %136 = vector.broadcast %135 : f32 to vector<9x16xf32>
      %137 = arith.mulf %131, %136 : vector<9x16xf32>
      %138 = vector.extract_strided_slice %83 {offsets = [1, 0, 0], sizes = [1, 9, 16], strides = [1, 1, 1]} : vector<4x9x16xf32> to vector<1x9x16xf32>
      %139 = vector.shape_cast %138 : vector<1x9x16xf32> to vector<9x16xf32>
      %c4_i32_72 = arith.constant 4 : i32
      %140 = arith.muli %129, %c4_i32_72 : i32
      %c1_i32_73 = arith.constant 1 : i32
      %141 = arith.addi %140, %c1_i32_73 : i32
      %142 = arith.index_cast %141 : i32 to index
      %143 = memref.load %arg2[%142] : memref<32xf32, #tpu.memory_space<smem>>
      %144 = vector.broadcast %143 : f32 to vector<9x16xf32>
      %145 = arith.mulf %139, %144 : vector<9x16xf32>
      %146 = vector.extract_strided_slice %83 {offsets = [2, 0, 0], sizes = [1, 9, 16], strides = [1, 1, 1]} : vector<4x9x16xf32> to vector<1x9x16xf32>
      %147 = vector.shape_cast %146 : vector<1x9x16xf32> to vector<9x16xf32>
      %c4_i32_74 = arith.constant 4 : i32
      %148 = arith.muli %129, %c4_i32_74 : i32
      %c2_i32_75 = arith.constant 2 : i32
      %149 = arith.addi %148, %c2_i32_75 : i32
      %150 = arith.index_cast %149 : i32 to index
      %151 = memref.load %arg2[%150] : memref<32xf32, #tpu.memory_space<smem>>
      %152 = vector.broadcast %151 : f32 to vector<9x16xf32>
      %153 = arith.mulf %147, %152 : vector<9x16xf32>
      %154 = vector.extract_strided_slice %83 {offsets = [3, 0, 0], sizes = [1, 9, 16], strides = [1, 1, 1]} : vector<4x9x16xf32> to vector<1x9x16xf32>
      %155 = vector.shape_cast %154 : vector<1x9x16xf32> to vector<9x16xf32>
      %c4_i32_76 = arith.constant 4 : i32
      %156 = arith.muli %129, %c4_i32_76 : i32
      %c3_i32_77 = arith.constant 3 : i32
      %157 = arith.addi %156, %c3_i32_77 : i32
      %158 = arith.index_cast %157 : i32 to index
      %159 = memref.load %arg2[%158] : memref<32xf32, #tpu.memory_space<smem>>
      %160 = vector.broadcast %159 : f32 to vector<9x16xf32>
      %161 = arith.mulf %155, %160 : vector<9x16xf32>
      %162 = arith.addf %137, %145 : vector<9x16xf32>
      %163 = arith.addf %153, %161 : vector<9x16xf32>
      %164 = arith.addf %162, %163 : vector<9x16xf32>
      %165 = arith.index_cast %129 : i32 to index
      %166 = memref.load %arg3[%165] : memref<8xf32, #tpu.memory_space<smem>>
      %167 = vector.broadcast %166 : f32 to vector<9x16xf32>
      %168 = arith.addf %164, %167 : vector<9x16xf32>
      %c1_78 = arith.constant 1 : index
      %c0_79 = arith.constant 0 : index
      %c0_80 = arith.constant 0 : index
      %169 = vector.load %arg8[%c1_78, %c0_79, %c0_80] : memref<4x9x16xf32, #tpu.memory_space<vmem>>, vector<1x9x16xf32>
      %170 = vector.shape_cast %169 : vector<1x9x16xf32> to vector<9x16xf32>
      %171 = vector.shape_cast %168 : vector<9x16xf32> to vector<1x9x16xf32>
      tpu.vector_store %arg8[%c1_78, %c0_79, %c0_80], %171 {strides = array<i32>} : memref<4x9x16xf32, #tpu.memory_space<vmem>>, vector<1x9x16xf32>,
      %c4_i32_81 = arith.constant 4 : i32
      %172 = arith.muli %arg0, %c4_i32_81 : i32
      %c2_i32_82 = arith.constant 2 : i32
      %173 = arith.addi %172, %c2_i32_82 : i32
      %174 = vector.extract_strided_slice %83 {offsets = [0, 0, 0], sizes = [1, 9, 16], strides = [1, 1, 1]} : vector<4x9x16xf32> to vector<1x9x16xf32>
      %175 = vector.shape_cast %174 : vector<1x9x16xf32> to vector<9x16xf32>
      %c4_i32_83 = arith.constant 4 : i32
      %176 = arith.muli %173, %c4_i32_83 : i32
      %c0_i32_84 = arith.constant 0 : i32
      %177 = arith.addi %176, %c0_i32_84 : i32
      %178 = arith.index_cast %177 : i32 to index
      %179 = memref.load %arg2[%178] : memref<32xf32, #tpu.memory_space<smem>>
      %180 = vector.broadcast %179 : f32 to vector<9x16xf32>
      %181 = arith.mulf %175, %180 : vector<9x16xf32>
      %182 = vector.extract_strided_slice %83 {offsets = [1, 0, 0], sizes = [1, 9, 16], strides = [1, 1, 1]} : vector<4x9x16xf32> to vector<1x9x16xf32>
      %183 = vector.shape_cast %182 : vector<1x9x16xf32> to vector<9x16xf32>
      %c4_i32_85 = arith.constant 4 : i32
      %184 = arith.muli %173, %c4_i32_85 : i32
      %c1_i32_86 = arith.constant 1 : i32
      %185 = arith.addi %184, %c1_i32_86 : i32
      %186 = arith.index_cast %185 : i32 to index
      %187 = memref.load %arg2[%186] : memref<32xf32, #tpu.memory_space<smem>>
      %188 = vector.broadcast %187 : f32 to vector<9x16xf32>
      %189 = arith.mulf %183, %188 : vector<9x16xf32>
      %190 = vector.extract_strided_slice %83 {offsets = [2, 0, 0], sizes = [1, 9, 16], strides = [1, 1, 1]} : vector<4x9x16xf32> to vector<1x9x16xf32>
      %191 = vector.shape_cast %190 : vector<1x9x16xf32> to vector<9x16xf32>
      %c4_i32_87 = arith.constant 4 : i32
      %192 = arith.muli %173, %c4_i32_87 : i32
      %c2_i32_88 = arith.constant 2 : i32
      %193 = arith.addi %192, %c2_i32_88 : i32
      %194 = arith.index_cast %193 : i32 to index
      %195 = memref.load %arg2[%194] : memref<32xf32, #tpu.memory_space<smem>>
      %196 = vector.broadcast %195 : f32 to vector<9x16xf32>
      %197 = arith.mulf %191, %196 : vector<9x16xf32>
      %198 = vector.extract_strided_slice %83 {offsets = [3, 0, 0], sizes = [1, 9, 16], strides = [1, 1, 1]} : vector<4x9x16xf32> to vector<1x9x16xf32>
      %199 = vector.shape_cast %198 : vector<1x9x16xf32> to vector<9x16xf32>
      %c4_i32_89 = arith.constant 4 : i32
      %200 = arith.muli %173, %c4_i32_89 : i32
      %c3_i32_90 = arith.constant 3 : i32
      %201 = arith.addi %200, %c3_i32_90 : i32
      %202 = arith.index_cast %201 : i32 to index
      %203 = memref.load %arg2[%202] : memref<32xf32, #tpu.memory_space<smem>>
      %204 = vector.broadcast %203 : f32 to vector<9x16xf32>
      %205 = arith.mulf %199, %204 : vector<9x16xf32>
      %206 = arith.addf %181, %189 : vector<9x16xf32>
      %207 = arith.addf %197, %205 : vector<9x16xf32>
      %208 = arith.addf %206, %207 : vector<9x16xf32>
      %209 = arith.index_cast %173 : i32 to index
      %210 = memref.load %arg3[%209] : memref<8xf32, #tpu.memory_space<smem>>
      %211 = vector.broadcast %210 : f32 to vector<9x16xf32>
      %212 = arith.addf %208, %211 : vector<9x16xf32>
      %c2_91 = arith.constant 2 : index
      %c0_92 = arith.constant 0 : index
      %c0_93 = arith.constant 0 : index
      %213 = vector.load %arg8[%c2_91, %c0_92, %c0_93] : memref<4x9x16xf32, #tpu.memory_space<vmem>>, vector<1x9x16xf32>
      %214 = vector.shape_cast %213 : vector<1x9x16xf32> to vector<9x16xf32>
      %215 = vector.shape_cast %212 : vector<9x16xf32> to vector<1x9x16xf32>
      tpu.vector_store %arg8[%c2_91, %c0_92, %c0_93], %215 {strides = array<i32>} : memref<4x9x16xf32, #tpu.memory_space<vmem>>, vector<1x9x16xf32>,
      %c4_i32_94 = arith.constant 4 : i32
      %216 = arith.muli %arg0, %c4_i32_94 : i32
      %c3_i32_95 = arith.constant 3 : i32
      %217 = arith.addi %216, %c3_i32_95 : i32
      %218 = vector.extract_strided_slice %83 {offsets = [0, 0, 0], sizes = [1, 9, 16], strides = [1, 1, 1]} : vector<4x9x16xf32> to vector<1x9x16xf32>
      %219 = vector.shape_cast %218 : vector<1x9x16xf32> to vector<9x16xf32>
      %c4_i32_96 = arith.constant 4 : i32
      %220 = arith.muli %217, %c4_i32_96 : i32
      %c0_i32_97 = arith.constant 0 : i32
      %221 = arith.addi %220, %c0_i32_97 : i32
      %222 = arith.index_cast %221 : i32 to index
      %223 = memref.load %arg2[%222] : memref<32xf32, #tpu.memory_space<smem>>
      %224 = vector.broadcast %223 : f32 to vector<9x16xf32>
      %225 = arith.mulf %219, %224 : vector<9x16xf32>
      %226 = vector.extract_strided_slice %83 {offsets = [1, 0, 0], sizes = [1, 9, 16], strides = [1, 1, 1]} : vector<4x9x16xf32> to vector<1x9x16xf32>
      %227 = vector.shape_cast %226 : vector<1x9x16xf32> to vector<9x16xf32>
      %c4_i32_98 = arith.constant 4 : i32
      %228 = arith.muli %217, %c4_i32_98 : i32
      %c1_i32_99 = arith.constant 1 : i32
      %229 = arith.addi %228, %c1_i32_99 : i32
      %230 = arith.index_cast %229 : i32 to index
      %231 = memref.load %arg2[%230] : memref<32xf32, #tpu.memory_space<smem>>
      %232 = vector.broadcast %231 : f32 to vector<9x16xf32>
      %233 = arith.mulf %227, %232 : vector<9x16xf32>
      %234 = vector.extract_strided_slice %83 {offsets = [2, 0, 0], sizes = [1, 9, 16], strides = [1, 1, 1]} : vector<4x9x16xf32> to vector<1x9x16xf32>
      %235 = vector.shape_cast %234 : vector<1x9x16xf32> to vector<9x16xf32>
      %c4_i32_100 = arith.constant 4 : i32
      %236 = arith.muli %217, %c4_i32_100 : i32
      %c2_i32_101 = arith.constant 2 : i32
      %237 = arith.addi %236, %c2_i32_101 : i32
      %238 = arith.index_cast %237 : i32 to index
      %239 = memref.load %arg2[%238] : memref<32xf32, #tpu.memory_space<smem>>
      %240 = vector.broadcast %239 : f32 to vector<9x16xf32>
      %241 = arith.mulf %235, %240 : vector<9x16xf32>
      %242 = vector.extract_strided_slice %83 {offsets = [3, 0, 0], sizes = [1, 9, 16], strides = [1, 1, 1]} : vector<4x9x16xf32> to vector<1x9x16xf32>
      %243 = vector.shape_cast %242 : vector<1x9x16xf32> to vector<9x16xf32>
      %c4_i32_102 = arith.constant 4 : i32
      %244 = arith.muli %217, %c4_i32_102 : i32
      %c3_i32_103 = arith.constant 3 : i32
      %245 = arith.addi %244, %c3_i32_103 : i32
      %246 = arith.index_cast %245 : i32 to index
      %247 = memref.load %arg2[%246] : memref<32xf32, #tpu.memory_space<smem>>
      %248 = vector.broadcast %247 : f32 to vector<9x16xf32>
      %249 = arith.mulf %243, %248 : vector<9x16xf32>
      %250 = arith.addf %225, %233 : vector<9x16xf32>
      %251 = arith.addf %241, %249 : vector<9x16xf32>
      %252 = arith.addf %250, %251 : vector<9x16xf32>
      %253 = arith.index_cast %217 : i32 to index
      %254 = memref.load %arg3[%253] : memref<8xf32, #tpu.memory_space<smem>>
      %255 = vector.broadcast %254 : f32 to vector<9x16xf32>
      %256 = arith.addf %252, %255 : vector<9x16xf32>
      %c3_104 = arith.constant 3 : index
      %c0_105 = arith.constant 0 : index
      %c0_106 = arith.constant 0 : index
      %257 = vector.load %arg8[%c3_104, %c0_105, %c0_106] : memref<4x9x16xf32, #tpu.memory_space<vmem>>, vector<1x9x16xf32>
      %258 = vector.shape_cast %257 : vector<1x9x16xf32> to vector<9x16xf32>
      %259 = vector.shape_cast %256 : vector<9x16xf32> to vector<1x9x16xf32>
      tpu.vector_store %arg8[%c3_104, %c0_105, %c0_106], %259 {strides = array<i32>} : memref<4x9x16xf32, #tpu.memory_space<vmem>>, vector<1x9x16xf32>,
    } else {
    }
    %c0 = arith.constant 0 : index
    %c0_1 = arith.constant 0 : index
    %c0_2 = arith.constant 0 : index
    %3 = vector.load %arg8[%c0, %c0_1, %c0_2] : memref<4x9x16xf32, #tpu.memory_space<vmem>>, vector<1x9x16xf32>
    %4 = vector.shape_cast %3 : vector<1x9x16xf32> to vector<9x16xf32>
    %c0_3 = arith.constant 0 : index
    %c0_4 = arith.constant 0 : index
    %c0_5 = arith.constant 0 : index
    %5 = vector.load %arg5[%c0_3, %c0_4, %c0_5] : memref<4x16x16xbf16, #tpu.memory_space<vmem>>, vector<1x16x16xbf16>
    %6 = vector.shape_cast %5 : vector<1x16x16xbf16> to vector<16x16xbf16>
    %7 = arith.truncf %4 : vector<9x16xf32> to vector<9x16xbf16>
    %cst = arith.constant dense<0.000000e+00> : vector<9x16xf32>
    %8 = tpu.matmul %7, %6, %cst {dimension_numbers = #tpu.dot_dimension_numbers<[1], [0], [0], [1], [0, 0, 1, 1], [], []>} : vector<9x16xbf16>, vector<16x16xbf16>, vector<9x16xf32> -> vector<9x16xf32>
    %c0_6 = arith.constant 0 : index
    %c0_7 = arith.constant 0 : index
    %c0_8 = arith.constant 0 : index
    %9 = vector.load %arg6[%c0_6, %c0_7, %c0_8] : memref<4x1x16xf32, #tpu.memory_space<vmem>>, vector<1x1x16xf32>
    %10 = vector.shape_cast %9 : vector<1x1x16xf32> to vector<1x16xf32>
    %11 = vector.broadcast %10 : vector<1x16xf32> to vector<9x16xf32>
    %12 = arith.mulf %8, %11 : vector<9x16xf32>
    %13 = arith.mulf %12, %4 : vector<9x16xf32>
    %14 = arith.addf %13, %4 : vector<9x16xf32>
    %cst_9 = arith.constant 0.000000e+00 : f32
    %15 = vector.broadcast %cst_9 : f32 to vector<9x16xf32>
    %16 = arith.cmpf oge, %14, %15 : vector<9x16xf32>
    %cst_10 = arith.constant 2.000000e-01 : f32
    %17 = vector.broadcast %cst_10 : f32 to vector<9x16xf32>
    %18 = arith.mulf %17, %14 : vector<9x16xf32>
    %19 = arith.select %16, %14, %18 : vector<9x16xi1>, vector<9x16xf32>
    %c0_11 = arith.constant 0 : index
    %c0_12 = arith.constant 0 : index
    %c0_13 = arith.constant 0 : index
    %20 = vector.load %arg7[%c0_11, %c0_12, %c0_13] : memref<4x9x16xf32, #tpu.memory_space<vmem>>, vector<1x9x16xf32>
    %21 = vector.shape_cast %20 : vector<1x9x16xf32> to vector<9x16xf32>
    %22 = vector.shape_cast %19 : vector<9x16xf32> to vector<1x9x16xf32>
    tpu.vector_store %arg7[%c0_11, %c0_12, %c0_13], %22 {strides = array<i32>} : memref<4x9x16xf32, #tpu.memory_space<vmem>>, vector<1x9x16xf32>,
    %c1 = arith.constant 1 : index
    %c0_14 = arith.constant 0 : index
    %c0_15 = arith.constant 0 : index
    %23 = vector.load %arg8[%c1, %c0_14, %c0_15] : memref<4x9x16xf32, #tpu.memory_space<vmem>>, vector<1x9x16xf32>
    %24 = vector.shape_cast %23 : vector<1x9x16xf32> to vector<9x16xf32>
    %c1_16 = arith.constant 1 : index
    %c0_17 = arith.constant 0 : index
    %c0_18 = arith.constant 0 : index
    %25 = vector.load %arg5[%c1_16, %c0_17, %c0_18] : memref<4x16x16xbf16, #tpu.memory_space<vmem>>, vector<1x16x16xbf16>
    %26 = vector.shape_cast %25 : vector<1x16x16xbf16> to vector<16x16xbf16>
    %27 = arith.truncf %24 : vector<9x16xf32> to vector<9x16xbf16>
    %cst_19 = arith.constant dense<0.000000e+00> : vector<9x16xf32>
    %28 = tpu.matmul %27, %26, %cst_19 {dimension_numbers = #tpu.dot_dimension_numbers<[1], [0], [0], [1], [0, 0, 1, 1], [], []>} : vector<9x16xbf16>, vector<16x16xbf16>, vector<9x16xf32> -> vector<9x16xf32>
    %c1_20 = arith.constant 1 : index
    %c0_21 = arith.constant 0 : index
    %c0_22 = arith.constant 0 : index
    %29 = vector.load %arg6[%c1_20, %c0_21, %c0_22] : memref<4x1x16xf32, #tpu.memory_space<vmem>>, vector<1x1x16xf32>
    %30 = vector.shape_cast %29 : vector<1x1x16xf32> to vector<1x16xf32>
    %31 = vector.broadcast %30 : vector<1x16xf32> to vector<9x16xf32>
    %32 = arith.mulf %28, %31 : vector<9x16xf32>
    %33 = arith.mulf %32, %24 : vector<9x16xf32>
    %34 = arith.addf %33, %24 : vector<9x16xf32>
    %cst_23 = arith.constant 0.000000e+00 : f32
    %35 = vector.broadcast %cst_23 : f32 to vector<9x16xf32>
    %36 = arith.cmpf oge, %34, %35 : vector<9x16xf32>
    %cst_24 = arith.constant 2.000000e-01 : f32
    %37 = vector.broadcast %cst_24 : f32 to vector<9x16xf32>
    %38 = arith.mulf %37, %34 : vector<9x16xf32>
    %39 = arith.select %36, %34, %38 : vector<9x16xi1>, vector<9x16xf32>
    %c1_25 = arith.constant 1 : index
    %c0_26 = arith.constant 0 : index
    %c0_27 = arith.constant 0 : index
    %40 = vector.load %arg7[%c1_25, %c0_26, %c0_27] : memref<4x9x16xf32, #tpu.memory_space<vmem>>, vector<1x9x16xf32>
    %41 = vector.shape_cast %40 : vector<1x9x16xf32> to vector<9x16xf32>
    %42 = vector.shape_cast %39 : vector<9x16xf32> to vector<1x9x16xf32>
    tpu.vector_store %arg7[%c1_25, %c0_26, %c0_27], %42 {strides = array<i32>} : memref<4x9x16xf32, #tpu.memory_space<vmem>>, vector<1x9x16xf32>,
    %c2 = arith.constant 2 : index
    %c0_28 = arith.constant 0 : index
    %c0_29 = arith.constant 0 : index
    %43 = vector.load %arg8[%c2, %c0_28, %c0_29] : memref<4x9x16xf32, #tpu.memory_space<vmem>>, vector<1x9x16xf32>
    %44 = vector.shape_cast %43 : vector<1x9x16xf32> to vector<9x16xf32>
    %c2_30 = arith.constant 2 : index
    %c0_31 = arith.constant 0 : index
    %c0_32 = arith.constant 0 : index
    %45 = vector.load %arg5[%c2_30, %c0_31, %c0_32] : memref<4x16x16xbf16, #tpu.memory_space<vmem>>, vector<1x16x16xbf16>
    %46 = vector.shape_cast %45 : vector<1x16x16xbf16> to vector<16x16xbf16>
    %47 = arith.truncf %44 : vector<9x16xf32> to vector<9x16xbf16>
    %cst_33 = arith.constant dense<0.000000e+00> : vector<9x16xf32>
    %48 = tpu.matmul %47, %46, %cst_33 {dimension_numbers = #tpu.dot_dimension_numbers<[1], [0], [0], [1], [0, 0, 1, 1], [], []>} : vector<9x16xbf16>, vector<16x16xbf16>, vector<9x16xf32> -> vector<9x16xf32>
    %c2_34 = arith.constant 2 : index
    %c0_35 = arith.constant 0 : index
    %c0_36 = arith.constant 0 : index
    %49 = vector.load %arg6[%c2_34, %c0_35, %c0_36] : memref<4x1x16xf32, #tpu.memory_space<vmem>>, vector<1x1x16xf32>
    %50 = vector.shape_cast %49 : vector<1x1x16xf32> to vector<1x16xf32>
    %51 = vector.broadcast %50 : vector<1x16xf32> to vector<9x16xf32>
    %52 = arith.mulf %48, %51 : vector<9x16xf32>
    %53 = arith.mulf %52, %44 : vector<9x16xf32>
    %54 = arith.addf %53, %44 : vector<9x16xf32>
    %cst_37 = arith.constant 0.000000e+00 : f32
    %55 = vector.broadcast %cst_37 : f32 to vector<9x16xf32>
    %56 = arith.cmpf oge, %54, %55 : vector<9x16xf32>
    %cst_38 = arith.constant 2.000000e-01 : f32
    %57 = vector.broadcast %cst_38 : f32 to vector<9x16xf32>
    %58 = arith.mulf %57, %54 : vector<9x16xf32>
    %59 = arith.select %56, %54, %58 : vector<9x16xi1>, vector<9x16xf32>
    %c2_39 = arith.constant 2 : index
    %c0_40 = arith.constant 0 : index
    %c0_41 = arith.constant 0 : index
    %60 = vector.load %arg7[%c2_39, %c0_40, %c0_41] : memref<4x9x16xf32, #tpu.memory_space<vmem>>, vector<1x9x16xf32>
    %61 = vector.shape_cast %60 : vector<1x9x16xf32> to vector<9x16xf32>
    %62 = vector.shape_cast %59 : vector<9x16xf32> to vector<1x9x16xf32>
    tpu.vector_store %arg7[%c2_39, %c0_40, %c0_41], %62 {strides = array<i32>} : memref<4x9x16xf32, #tpu.memory_space<vmem>>, vector<1x9x16xf32>,
    %c3 = arith.constant 3 : index
    %c0_42 = arith.constant 0 : index
    %c0_43 = arith.constant 0 : index
    %63 = vector.load %arg8[%c3, %c0_42, %c0_43] : memref<4x9x16xf32, #tpu.memory_space<vmem>>, vector<1x9x16xf32>
    %64 = vector.shape_cast %63 : vector<1x9x16xf32> to vector<9x16xf32>
    %c3_44 = arith.constant 3 : index
    %c0_45 = arith.constant 0 : index
    %c0_46 = arith.constant 0 : index
    %65 = vector.load %arg5[%c3_44, %c0_45, %c0_46] : memref<4x16x16xbf16, #tpu.memory_space<vmem>>, vector<1x16x16xbf16>
    %66 = vector.shape_cast %65 : vector<1x16x16xbf16> to vector<16x16xbf16>
    %67 = arith.truncf %64 : vector<9x16xf32> to vector<9x16xbf16>
    %cst_47 = arith.constant dense<0.000000e+00> : vector<9x16xf32>
    %68 = tpu.matmul %67, %66, %cst_47 {dimension_numbers = #tpu.dot_dimension_numbers<[1], [0], [0], [1], [0, 0, 1, 1], [], []>} : vector<9x16xbf16>, vector<16x16xbf16>, vector<9x16xf32> -> vector<9x16xf32>
    %c3_48 = arith.constant 3 : index
    %c0_49 = arith.constant 0 : index
    %c0_50 = arith.constant 0 : index
    %69 = vector.load %arg6[%c3_48, %c0_49, %c0_50] : memref<4x1x16xf32, #tpu.memory_space<vmem>>, vector<1x1x16xf32>
    %70 = vector.shape_cast %69 : vector<1x1x16xf32> to vector<1x16xf32>
    %71 = vector.broadcast %70 : vector<1x16xf32> to vector<9x16xf32>
    %72 = arith.mulf %68, %71 : vector<9x16xf32>
    %73 = arith.mulf %72, %64 : vector<9x16xf32>
    %74 = arith.addf %73, %64 : vector<9x16xf32>
    %cst_51 = arith.constant 0.000000e+00 : f32
    %75 = vector.broadcast %cst_51 : f32 to vector<9x16xf32>
    %76 = arith.cmpf oge, %74, %75 : vector<9x16xf32>
    %cst_52 = arith.constant 2.000000e-01 : f32
    %77 = vector.broadcast %cst_52 : f32 to vector<9x16xf32>
    %78 = arith.mulf %77, %74 : vector<9x16xf32>
    %79 = arith.select %76, %74, %78 : vector<9x16xi1>, vector<9x16xf32>
    %c3_53 = arith.constant 3 : index
    %c0_54 = arith.constant 0 : index
    %c0_55 = arith.constant 0 : index
    %80 = vector.load %arg7[%c3_53, %c0_54, %c0_55] : memref<4x9x16xf32, #tpu.memory_space<vmem>>, vector<1x9x16xf32>
    %81 = vector.shape_cast %80 : vector<1x9x16xf32> to vector<9x16xf32>
    %82 = vector.shape_cast %79 : vector<9x16xf32> to vector<1x9x16xf32>
    tpu.vector_store %arg7[%c3_53, %c0_54, %c0_55], %82 {strides = array<i32>} : memref<4x9x16xf32, #tpu.memory_space<vmem>>, vector<1x9x16xf32>,
    return
  }
  func.func @transform_0(%arg0: i32, %arg1: i32) -> i32 {
    %c0_i32 = arith.constant 0 : i32
    %c0_i32_0 = arith.constant 0 : i32
    return %c0_i32 : i32
  }
  func.func @transform_1(%arg0: i32, %arg1: i32) -> i32 {
    %c0_i32 = arith.constant 0 : i32
    %c0_i32_0 = arith.constant 0 : i32
    return %c0_i32 : i32
  }
  func.func @transform_2(%arg0: i32, %arg1: i32) -> (i32, i32, i32) {
    %c0_i32 = arith.constant 0 : i32
    %c0_i32_0 = arith.constant 0 : i32
    %c0_i32_1 = arith.constant 0 : i32
    %c0_i32_2 = arith.constant 0 : i32
    return %c0_i32, %c0_i32_0, %c0_i32_1 : i32, i32, i32
  }
  func.func @transform_3(%arg0: i32, %arg1: i32) -> (i32, i32, i32) {
    %c0_i32 = arith.constant 0 : i32
    %c0_i32_0 = arith.constant 0 : i32
    return %arg0, %c0_i32, %arg1 : i32, i32, i32
  }
  func.func @transform_4(%arg0: i32, %arg1: i32) -> (i32, i32, i32) {
    %c0_i32 = arith.constant 0 : i32
    %c0_i32_0 = arith.constant 0 : i32
    return %arg0, %c0_i32, %arg1 : i32, i32, i32
  }
  func.func @transform_5(%arg0: i32, %arg1: i32) -> (i32, i32, i32) {
    %c0_i32 = arith.constant 0 : i32
    %c0_i32_0 = arith.constant 0 : i32
    return %arg0, %c0_i32, %arg1 : i32, i32, i32
  }
}

</mosaic_0001>

<bundles_post_ra>
// kernel: cross_head_bak_forward.1
= control target key start
LH: loop header
LB: loop body
LE: loop exit
PB: predicated region body
PF: predicated region fallthrough
CT: control target
= control target key end

     0   :  { %s1453_s0 = inlined_call_operand.vmem [shape: f32[32], index: 0, kind: input, shape index: {}]   ;;  %s1454_s1 = inlined_call_operand.vmem [shape: f32[8], index: 1, kind: input, shape index: {}]   ;;  %s1455_s2 = inlined_call_operand.vmem [shape: f32[4,9,16], index: 2, kind: input, shape index: {}]   ;;  %s1456_s3 = inlined_call_operand.vmem [shape: bf16[8,16,16], index: 3, kind: input, shape index: {}]   ;;  %s1457_s4 = inlined_call_operand.vmem [shape: f32[8,1,16], index: 4, kind: input, shape index: {}]   ;;  %s1458_s5 = inlined_call_operand.vmem [shape: f32[8,9,16], index: 5, kind: output, shape index: {}]  }
   0x1   :  { %1462 = sst [smem:[#allocation9_spill]] %s1453_s0 }
   0x2   :  { %1463 = sst [smem:[#allocation10_spill]] %s1454_s1 }
   0x3   :  { %10 = vsyncpa [#allocation4], 0 }
   0x4   :  { %11 = vsyncpa [#allocation6], 0  ;;  %s1150_s18 = smov 0   ;;  %s1152_s19 = smov 0  }
   0x5   :  { %s1154_s20 = smov 0  }
   0x6 LB: > { %s910_s21 = sadd.s32 4294967295, %s1114_s20   ;;  %s29_s22 = sadd.s32 1, %s1110_s19  ;;  %s1114_s20 = sphi %s1154_s20, %s17_s20   ;;  %s1110_s19 = sphi %s1152_s19, %s1472_s19   ;;  %s1106_s18 = sphi %s1150_s18, %s1471_s18  }
   0x7   : > { %p31_p0 = scmp.ge.s32.totalorder %s29_s22, 2  ;;  %p912_p1 = scmp.ge.s32.totalorder %s1114_s20, 1 }
   0x8   : > { %p181_p2 = scmp.lt.s32.totalorder %s1114_s20, 3  ;;  %p1175_p4 = scmp.eq.s32.totalorder %s910_s21, 0 }
   0x9   : > { %s1474_s22 = smov (%p31_p0, %s29_s22), 0  ;;  %s1466_s0 = sld [smem:[#allocation9_spill]] }
   0xa   : > { %p1171_p3 = pnand %p912_p1, %p181_p2  ;;  %s1467_s1 = sld [smem:[#allocation10_spill]] }
   0xb   : > { %s1465_s24 = scalar_select %p1175_p4, 1, 0 }
   0xc   : > { %s1464_s23 = scalar_select %p1171_p3, 1, 0 }
   0xd   : > { %p1011_p5 = pneg %p1171_p3 }
   0xf   : > { %s194_s27 = sshll.u32 %s1466_s0, 4  ;;  %p1189_p6 = pnand %p1175_p4, %p1011_p5  ;;  %s195_s27 = int_to_ptr.vmem [resolvable:$true] %s194_s27 }
  0x10   : > { %s205_s30 = sshll.u32 %s1467_s1, 4  ;;  %s1054_s7 = scalar_lea.vmem %s195_s27, 16  ;;  %s206_s30 = int_to_ptr.vmem [resolvable:$true] %s205_s30 }
  0x11   : > { %p1055_p7 = scmp.ne.s32.totalorder %s195_s27, %s1054_s7  ;;  %p1056_p8 = pneg %p1189_p6 }
  0x12   : > { %p1062_p11 = scmp.lt.s32.totalorder %s195_s27, %s195_s27  ;;  %p1063_p12 = scmp.lt.s32.totalorder %s1054_s7, %s1054_s7 }
  0x13   : > { %p1057_p9 = pnand %p1056_p8, %p1055_p7 }
  0x14   : > { %p1064_p13 = por %p1063_p12, %p1062_p11 }
  0x15   : > { %p1058_p10 = pneg %p1057_p9 }
  0x17   : > { %p1065_p0 = pnand %p1064_p13, %p1058_p10 }
  0x19   : > { %1068 = shalt.err (!%p1065_p0)
}
  0x1a   : > { %s1116_s8 = smov [#allocation3]   ;;  %s1069_s9 = scalar_lea.vmem %s206_s30, 16 }
  0x1b   : > { %1014 = dma.vmem_to_smem (!%p1189_p6), %s195_s27, 16, %s1116_s8, [#allocation4]  }
  0x1c   : > { %p1070_p1 = scmp.ne.s32.totalorder %s206_s30, %s1069_s9  ;;  %p1077_p4 = scmp.lt.s32.totalorder %s206_s30, %s206_s30 }
  0x1d   : > { %p1078_p3 = scmp.lt.s32.totalorder %s1069_s9, %s1069_s9 }
  0x1e   : > { %p1072_p2 = pnand %p1070_p1, %p1056_p8 }
  0x1f   : > { %p1079_p7 = por %p1078_p3, %p1077_p4 }
  0x20   : > { %p1073_p5 = pneg %p1072_p2 }
  0x22   : > { %p1080_p9 = pnand %p1079_p7, %p1073_p5 }
  0x24   : > { %1083 = shalt.err (!%p1080_p9)
}
  0x25   : > { %s1117_s10 = smov [#allocation5]   ;;  %p1469_p10 = scmp.ne.s32.totalorder %s1464_s23, 0 }
  0x26   : > { %1017 = dma.vmem_to_smem (!%p1189_p6), %s206_s30, 16, %s1117_s10, [#allocation6]  }
  0x27   : > { %245 = sbr.rel (%p1469_p10) target bundleno = 333 (0x14d), region = 40  ;;  %p1470_p11 = scmp.ne.s32.totalorder (!%p1469_p10), %s1465_s24, 0 }
  0x2e   : > { %1097 = dma.done.wait (%p1470_p11), [#allocation4], 16  }
  0x2f   : > { %1099 = vsyncadd (%p1470_p11), [#allocation4], 4294967280 }
  0x30   : > { %1101 = dma.done.wait (%p1470_p11), [#allocation6], 16  }
  0x31   : > { %1103 = vsyncadd (%p1470_p11), [#allocation6], 4294967280 }
  0x32   : > { %255 = sfence }
  0x33   : > { %s1210_s11 = sshll.u32 %s1106_s18, 2  ;;  %v1118_v0 = vmov 0.0   ;;  %s1219_s13 = sshll.u32 %s1106_s18, 4  ;;  %vm1119_vm0 = vmmov 0   ;;  %v1255_v3 = vld [vmem:[%s1455_s2] sm:$0xff]  ;;  %v1267_v6 = vld [vmem:[%s1455_s2 + $0x10] sm:$0xff] }
  0x34   : > { %979 = vmatprep.subr.bf16.mxu0 %v1118_v0  ;;  %p294_p3 = scmp.lt.s32.totalorder %s1210_s11, 7  ;;  %985 = vmatprep.subr.bf16.mxu1 %v1118_v0  ;;  %s1222_s14 = sld [smem:[#allocation5 + %s1210_s11]]  ;;  %v1260_v4 = vld [vmem:[%s1455_s2 + $0x8] sm:$0x1]  ;;  %v1272_v7 = vld [vmem:[%s1455_s2 + $0x18] sm:$0x1] }
  0x35   : > { %981 = vmatprep.mubr.msk.bf16.mxu0 %vm1119_vm0, %v1118_v0  ;;  %987 = vmatprep.mubr.msk.bf16.mxu1 %vm1119_vm0, %v1118_v0  ;;  %s403_s16 = sadd.s32 2, %s1210_s11  ;;  %s965_s18 = sadd.s32 8, %s1219_s13  ;;  %v1282_v11 = vld [vmem:[%s1455_s2 + $0x20] sm:$0xff]  ;;  %v1287_v12 = vld [vmem:[%s1455_s2 + $0x28] sm:$0x1]  ;;  %v1299_v16 = vld [vmem:[%s1455_s2 + $0x30] sm:$0xff] }
  0x36   : > { %s1216_s12 = scalar_select %p294_p3, %s1210_s11, 7  ;;  %v1304_v17 = vld [vmem:[%s1455_s2 + $0x38] sm:$0x1]  ;;  %vm367_vm1 = vcmask 122880   ;;  %vm365_vm2 = vcmask 130048  }
  0x37   : > { %s405_s24 = sld [smem:[#allocation3 + %s965_s18]]  ;;  %s409_s25 = sadd.s32 1, %s965_s18 }
  0x38   : > { %s960_s15 = sshll.u32 %s1216_s12, 3  ;;  %s1236_s26 = sld [smem:[#allocation3 + %s409_s25]] }
  0x39   : > { %s1233_s23 = scalar_lea.vmem %s1456_s3, %s960_s15  ;;  %s414_s27 = sadd.s32 2, %s965_s18 }
  0x3a   : > { %v1050_v1 = vld [vmem:[%s1233_s23] sm:$0xff]   ;;  %v1051_v2 = vld [vmem:[%s1233_s23 + $0x8] sm:$0xff]   ;;  %s1240_s28 = sld [smem:[#allocation3 + %s414_s27]]  ;;  %s419_s29 = sadd.s32 3, %s965_s18  ;;  %v362_v26 = vstv %s1222_s14 }
  0x3b   : > { %s1242_s30 = sld [smem:[#allocation3 + %s419_s29]]  ;;  %980 = vmatpush3.bf16.msra.mxu0 %v1050_v1  ;;  %986 = vmatpush3.bf16.msra.mxu1 %v1051_v2  ;;  %s437_s7 = sadd.s32 3, %s1210_s11 }
  0x3c   : > { %s1244_s6 = sld [smem:[#allocation5 + %s403_s16]]  ;;  %s967_s8 = sadd.s32 12, %s1219_s13  ;;  %991 = vmatprep.subr.bf16.mxu0 %v1118_v0  ;;  %997 = vmatprep.subr.bf16.mxu1 %v1118_v0 }
  0x3d   : > { %s1250_s9 = sld [smem:[#allocation3 + %s967_s8]]  ;;  %s443_s10 = sadd.s32 1, %s967_s8  ;;  %v406_v5 = vstv %s405_s24 }
  0x3e   : > { %s1262_s18 = sld [smem:[#allocation3 + %s443_s10]]  ;;  %s448_s25 = sadd.s32 2, %s967_s8  ;;  %v407_v8 = vmul.f32 %v406_v5, %v1255_v3  ;;  %v408_v9 = vmul.f32 %v406_v5, %v1260_v4  ;;  %v411_v10 = vstv %s1236_s26 }
  0x3f   : > { %s1277_s24 = sld [smem:[#allocation3 + %s448_s25]]  ;;  %s453_s10 = sadd.s32 3, %s967_s8  ;;  %v412_v13 = vmul.f32 %v411_v10, %v1267_v6  ;;  %v413_v14 = vmul.f32 %v411_v10, %v1272_v7 }
  0x40   : > { %v416_v15 = vstv %s1240_s28  ;;  %s1292_s1 = sld [smem:[#allocation3 + %s453_s10]]  ;;  %s345_s10 = sadd.s32 2, %s1219_s13 }
  0x41   : > { %s1294_s26 = sld [smem:[#allocation5 + %s437_s7]]  ;;  %v417_v18 = vmul.f32 %v416_v15, %v1282_v11  ;;  %v418_v19 = vmul.f32 %v416_v15, %v1287_v12  ;;  %v421_v20 = vstv %s1242_s30  ;;  %s340_s7 = sadd.s32 1, %s1219_s13  ;;  %v424_v23 = vadd.f32 %v412_v13, %v407_v8 }
  0x42   : > { %s1310_s28 = sld [smem:[#allocation3 + %s1219_s13]]  ;;  %v422_v21 = vmul.f32 %v421_v20, %v1299_v16  ;;  %v423_v22 = vmul.f32 %v421_v20, %v1304_v17  ;;  %v425_v24 = vadd.f32 %v413_v14, %v408_v9  ;;  %s350_s30 = sadd.s32 3, %s1219_s13  ;;  %v431_v29 = vstv %s1244_s6 }
  0x43   : > { %s1315_s29 = sld [smem:[#allocation3 + %s340_s7]]  ;;  %v440_v25 = vstv %s1250_s9  ;;  %s963_s21 = sadd.s32 4, %s1219_s13 }
  0x44   : > { %s1319_s15 = sld [smem:[#allocation3 + %s345_s10]]  ;;  %v426_v27 = vadd.f32 %v422_v21, %v417_v18  ;;  %v427_v28 = vadd.f32 %v423_v22, %v418_v19  ;;  %v441_v30 = vmul.f32 %v440_v25, %v1255_v3  ;;  %v442_v31 = vmul.f32 %v440_v25, %v1260_v4  ;;  %s375_s0 = sadd.s32 1, %s963_s21 }
  0x45   : > { %s1324_s17 = sld [smem:[#allocation3 + %s350_s30]]  ;;  %v445_v32 = vstv %s1262_s18  ;;  %v450_v33 = vstv %s1277_s24  ;;  %s380_s13 = sadd.s32 2, %s963_s21 }
  0x46   : > { %s1331_s9 = sld [smem:[#allocation3 + %s963_s21]]  ;;  %v428_v34 = vadd.f32 %v426_v27, %v424_v23  ;;  %v429_v35 = vadd.f32 %v427_v28, %v425_v24  ;;  %v446_v36 = vmul.f32 %v445_v32, %v1267_v6  ;;  %v447_v37 = vmul.f32 %v445_v32, %v1272_v7  ;;  %s385_s18 = sadd.s32 3, %s963_s21 }
  0x47   : > { %s1335_s6 = sld [smem:[#allocation3 + %s375_s0]]  ;;  %v451_v38 = vmul.f32 %v450_v33, %v1282_v11  ;;  %v452_v39 = vmul.f32 %v450_v33, %v1287_v12  ;;  %v455_v40 = vstv %s1292_s1  ;;  %v465_v41 = vstv %s1294_s26  ;;  %s369_s16 = sadd.s32 1, %s1210_s11 }
  0x48   : > { %v432_v42 = vadd.f32 %v431_v29, %v428_v34  ;;  %v433_v43 = vadd.f32 %v431_v29, %v429_v35  ;;  %v456_v44 = vmul.f32 %v455_v40, %v1299_v16  ;;  %v457_v45 = vmul.f32 %v455_v40, %v1304_v17  ;;  %s1343_s24 = sld [smem:[#allocation3 + %s380_s13]]  ;;  %v1052_v35 = vld [vmem:[%s1233_s23 + $0x10] sm:$0xff]   ;;  %v1053_v40 = vld [vmem:[%s1233_s23 + $0x18] sm:$0xff]   ;;  %s1410_s1 = scalar_lea.vmem %s1457_s4, %s1216_s12 }
  0x49   : > { %s1345_s8 = sld [smem:[#allocation3 + %s385_s18]]  ;;  %v458_v46 = vadd.f32 %v446_v36, %v441_v30  ;;  %v459_v47 = vadd.f32 %v447_v37, %v442_v31  ;;  %v337_v48 = vstv %s1310_s28  ;;  %v342_v49 = vstv %s1315_s29  ;;  %s961_s26 = sshll.u32 %s1216_s12, 4 }
  0x4a   : > { %436 = vst.msk [vmem:[#allocation2 + $0x28] sm:$0x1] %vm367_vm1, %v433_v43  ;;  %v460_v50 = vadd.f32 %v456_v44, %v451_v38  ;;  %v461_v51 = vadd.f32 %v457_v45, %v452_v39  ;;  %v338_v52 = vmul.f32 %v337_v48, %v1255_v3  ;;  %v339_v53 = vmul.f32 %v337_v48, %v1260_v4  ;;  %s1360_s11 = sld [smem:[#allocation5 + %s369_s16]]  ;;  %s1419_s28 = scalar_lea.vmem %s1458_s5, %s961_s26 }
  0x4b   : > { %435 = vst.msk [vmem:[#allocation2 + $0x20] sm:$0xff] %vm365_vm2, %v432_v42  ;;  %v343_v54 = vmul.f32 %v342_v49, %v1267_v6  ;;  %v344_v55 = vmul.f32 %v342_v49, %v1272_v7  ;;  %v347_v56 = vstv %s1319_s15  ;;  %v352_v57 = vstv %s1324_s17 }
  0x4c   : > { %v462_v58 = vadd.f32 %v460_v50, %v458_v46  ;;  %v463_v59 = vadd.f32 %v461_v51, %v459_v47  ;;  %v348_v60 = vmul.f32 %v347_v56, %v1282_v11  ;;  %v349_v61 = vmul.f32 %v347_v56, %v1287_v12  ;;  %v939_v51 = vld [vmem:[%s1410_s1 + $0x1] ss:$0 sm:$0xff] }
  0x4d   : > { %v353_v62 = vmul.f32 %v352_v57, %v1299_v16  ;;  %v354_v63 = vmul.f32 %v352_v57, %v1304_v17  ;;  %v355_v1 = vadd.f32 %v343_v54, %v338_v52  ;;  %v356_v2 = vadd.f32 %v344_v55, %v339_v53 }
  0x4e   : > { %v466_v5 = vadd.f32 %v465_v41, %v462_v58  ;;  %v467_v8 = vadd.f32 %v465_v41, %v463_v59  ;;  %v372_v9 = vstv %s1331_s9  ;;  %v377_v10 = vstv %s1335_s6  ;;  %v947_v59 = vld [vmem:[%s1410_s1 + $0x2] ss:$0 sm:$0xff] }
  0x4f   : > { %v357_v13 = vadd.f32 %v353_v62, %v348_v60  ;;  %v358_v14 = vadd.f32 %v354_v63, %v349_v61  ;;  %v373_v15 = vmul.f32 %v372_v9, %v1255_v3  ;;  %v374_v18 = vmul.f32 %v372_v9, %v1260_v4 }
  0x50   : > { %470 = vst.msk [vmem:[#allocation2 + $0x38] sm:$0x1] %vm367_vm1, %v467_v8  ;;  %v378_v19 = vmul.f32 %v377_v10, %v1267_v6  ;;  %v379_v20 = vmul.f32 %v377_v10, %v1272_v7  ;;  %v382_v21 = vstv %s1343_s24  ;;  %v387_v22 = vstv %s1345_s8 }
  0x51   : > { %469 = vst.msk [vmem:[#allocation2 + $0x30] sm:$0xff] %vm365_vm2, %v466_v5  ;;  %v359_v23 = vadd.f32 %v357_v13, %v355_v1  ;;  %v360_v24 = vadd.f32 %v358_v14, %v356_v2  ;;  %v383_v25 = vmul.f32 %v382_v21, %v1282_v11  ;;  %v384_v3 = vmul.f32 %v382_v21, %v1287_v12  ;;  %v1391_v37 = vld [vmem:[#allocation2 + $0x28] sm:$0x1]  ;;  %v955_v21 = vld [vmem:[%s1410_s1 + $0x3] ss:$0 sm:$0xff] }
  0x52   : > { %v388_v4 = vmul.f32 %v387_v22, %v1299_v16  ;;  %v389_v27 = vmul.f32 %v387_v22, %v1304_v17  ;;  %v390_v28 = vadd.f32 %v378_v19, %v373_v15  ;;  %v391_v29 = vadd.f32 %v379_v20, %v374_v18  ;;  %v630_v36 = vld [vmem:[#allocation2 + $0x20] sm:$0xff] }
  0x53   : > { %v363_v6 = vadd.f32 %v362_v26, %v359_v23  ;;  %v364_v30 = vadd.f32 %v362_v26, %v360_v24  ;;  %v397_v32 = vstv %s1360_s11  ;;  %v635_v42 = vpack.c.bf16 %v1391_v37, %v630_v36 }
  0x54   : > { %v392_v7 = vadd.f32 %v388_v4, %v383_v25  ;;  %v393_v31 = vadd.f32 %v389_v27, %v384_v3 }
  0x55   : > { %366 = vst.msk [vmem:[#allocation2] sm:$0xff] %vm365_vm2, %v363_v6 }
  0x56   : > { %368 = vst.msk [vmem:[#allocation2 + $0x8] sm:$0x1] %vm367_vm1, %v364_v30  ;;  %v394_v11 = vadd.f32 %v392_v7, %v390_v28  ;;  %v395_v12 = vadd.f32 %v393_v31, %v391_v29 }
  0x57   : > { %v1400_v44 = vld [vmem:[#allocation2 + $0x38] sm:$0x1] }
  0x58   : > { %v398_v16 = vadd.f32 %v397_v32, %v394_v11  ;;  %v399_v33 = vadd.f32 %v397_v32, %v395_v12  ;;  %v1398_v43 = vld [vmem:[#allocation2 + $0x30] sm:$0xff] }
  0x59   : > { %v715_v45 = vpack.c.bf16 %v1400_v44, %v1398_v43 }
  0x5a   : > { %401 = vst.msk [vmem:[#allocation2 + $0x10] sm:$0xff] %vm365_vm2, %v398_v16 }
  0x5b   : > { %402 = vst.msk [vmem:[#allocation2 + $0x18] sm:$0x1] %vm367_vm1, %v399_v33 }
  0x5c   : > { %v471_v17 = vld [vmem:[#allocation2] sm:$0xff] }
  0x5d   : > { %v472_v34 = vld [vmem:[#allocation2 + $0x8] sm:$0x1] }
  0x5e   : > { %v475_v26 = vpack.c.bf16 %v472_v34, %v471_v17 }
  0x60   : > { %982 = vmatmul.mubr.msk.bf16.vlgmr.msra.gmra.mrb[0].mxu0 %vm365_vm2, %v475_v26 }
  0x61   : > { %992 = vmatpush3.bf16.msra.mxu0 %v1052_v35  ;;  %993 = vmatprep.mubr.msk.bf16.mxu0 %vm1119_vm0, %v1118_v0  ;;  %v550_v38 = vld [vmem:[#allocation2 + $0x10] sm:$0xff] }
  0x62   : > { %v551_v39 = vld [vmem:[#allocation2 + $0x18] sm:$0x1] }
  0x63   : > { %v555_v41 = vpack.c.bf16 %v551_v39, %v550_v38 }
  0x65   : > { %988 = vmatmul.mubr.msk.bf16.vlgmr.msra.gmra.mrb[0].mxu1 %vm365_vm2, %v555_v41 }
  0x66   : > { %998 = vmatpush3.bf16.msra.mxu1 %v1053_v40  ;;  %999 = vmatprep.mubr.msk.bf16.mxu1 %vm1119_vm0, %v1118_v0  ;;  %v933_v0 = vld [vmem:[%s1410_s1] ss:$0 sm:$0xff] }
  0x68   : > { %994 = vmatmul.mubr.msk.bf16.vlgmr.msra.gmra.mrb[4].mxu0 %vm365_vm2, %v635_v42 }
  0x6d   : > { %1000 = vmatmul.mubr.msk.bf16.vlgmr.msra.gmra.mrb[4].mxu1 %vm365_vm2, %v715_v45 }
 0x133   : > { %v520_v46 = vpop.f32.mrb[0].mxu0 }
 0x134   : > { %v534_v47 = vmul.f32 %v933_v0, %v520_v46  ;;  %v983_v48 = vpop.f32.mrb[1].mxu0 }
 0x135   : > { %v523_v49 = vpop.f32.mrb[2].mxu0 }
 0x136   : > { %v536_v50 = vmul.f32 %v534_v47, %v471_v17  ;;  %v535_v52 = vmul.f32 %v933_v0, %v523_v49  ;;  %v984_v53 = vpop.f32.mrb[3].mxu0 }
 0x138   : > { %v538_v54 = vadd.f32 %v536_v50, %v471_v17  ;;  %v599_v55 = vpop.f32.mrb[0].mxu1  ;;  %v537_v56 = vmul.f32 %v535_v52, %v472_v34 }
 0x139   : > { %v614_v57 = vmul.f32 %v939_v51, %v599_v55  ;;  %v989_v58 = vpop.f32.mrb[1].mxu1 }
 0x13a   : > { %vm540_vm3 = vcmp.ge.f32.partialorder %v538_v54, 0.0  ;;  %v542_v60 = vmul.f32 0.2, %v538_v54  ;;  %v539_v61 = vadd.f32 %v537_v56, %v472_v34  ;;  %v602_v62 = vpop.f32.mrb[2].mxu1 }
 0x13b   : > { %v616_v63 = vmul.f32 %v614_v57, %v550_v38  ;;  %v615_v1 = vmul.f32 %v939_v51, %v602_v62  ;;  %v990_v2 = vpop.f32.mrb[3].mxu1  ;;  %v679_v5 = vpop.f32.mrb[4].mxu0 }
 0x13c   : > { %v544_v8 = vsel %vm540_vm3, %v538_v54, %v542_v60  ;;  %vm541_vm4 = vcmp.ge.f32.partialorder %v539_v61, 0.0  ;;  %v543_v9 = vmul.f32 0.2, %v539_v61  ;;  %v694_v10 = vmul.f32 %v947_v59, %v679_v5  ;;  %v995_v13 = vpop.f32.mrb[5].mxu0 }
 0x13d   : > { %546 = vst.msk [vmem:[%s1419_s28] sm:$0xff] %vm365_vm2, %v544_v8  ;;  %v618_v14 = vadd.f32 %v616_v63, %v550_v38  ;;  %v617_v15 = vmul.f32 %v615_v1, %v551_v39  ;;  %v682_v18 = vpop.f32.mrb[6].mxu0 }
 0x13e   : > { %v545_v19 = vsel %vm541_vm4, %v539_v61, %v543_v9  ;;  %v696_v20 = vmul.f32 %v694_v10, %v630_v36  ;;  %v695_v22 = vmul.f32 %v947_v59, %v682_v18  ;;  %v996_v23 = vpop.f32.mrb[7].mxu0 }
 0x13f   : > { %vm620_vm5 = vcmp.ge.f32.partialorder %v618_v14, 0.0  ;;  %v622_v24 = vmul.f32 0.2, %v618_v14  ;;  %548 = vst.msk [vmem:[%s1419_s28 + $0x8] sm:$0x1] %vm367_vm1, %v545_v19  ;;  %v619_v25 = vadd.f32 %v617_v15, %v551_v39 }
 0x140   : > { %v698_v3 = vadd.f32 %v696_v20, %v630_v36  ;;  %v759_v4 = vpop.f32.mrb[4].mxu1  ;;  %v697_v27 = vmul.f32 %v695_v22, %v1391_v37 }
 0x141   : > { %v624_v28 = vsel %vm620_vm5, %v618_v14, %v622_v24  ;;  %vm621_vm6 = vcmp.ge.f32.partialorder %v619_v25, 0.0  ;;  %v623_v29 = vmul.f32 0.2, %v619_v25  ;;  %v774_v6 = vmul.f32 %v955_v21, %v759_v4  ;;  %v1001_v30 = vpop.f32.mrb[5].mxu1 }
 0x142   : > { %940 = vst.msk [vmem:[%s1419_s28 + $0x10] sm:$0xff] %vm365_vm2, %v624_v28  ;;  %vm700_vm7 = vcmp.ge.f32.partialorder %v698_v3, 0.0  ;;  %v702_v7 = vmul.f32 0.2, %v698_v3  ;;  %v699_v31 = vadd.f32 %v697_v27, %v1391_v37  ;;  %v762_v32 = vpop.f32.mrb[6].mxu1 }
 0x143   : > { %v625_v11 = vsel %vm621_vm6, %v619_v25, %v623_v29  ;;  %v776_v12 = vmul.f32 %v774_v6, %v1398_v43  ;;  %v775_v16 = vmul.f32 %v955_v21, %v762_v32  ;;  %v1002_v33 = vpop.f32.mrb[7].mxu1 }
 0x144   : > { %941 = vst.msk [vmem:[%s1419_s28 + $0x18] sm:$0x1] %vm367_vm1, %v625_v11  ;;  %v704_v17 = vsel %vm700_vm7, %v698_v3, %v702_v7  ;;  %vm701_vm8 = vcmp.ge.f32.partialorder %v699_v31, 0.0  ;;  %v703_v34 = vmul.f32 0.2, %v699_v31 }
 0x145   : > { %948 = vst.msk [vmem:[%s1419_s28 + $0x20] sm:$0xff] %vm365_vm2, %v704_v17  ;;  %v778_v35 = vadd.f32 %v776_v12, %v1398_v43  ;;  %v777_v26 = vmul.f32 %v775_v16, %v1400_v44 }
 0x146   : > { %v705_v36 = vsel %vm701_vm8, %v699_v31, %v703_v34 }
 0x147   : > { %vm780_vm9 = vcmp.ge.f32.partialorder %v778_v35, 0.0  ;;  %v782_v37 = vmul.f32 0.2, %v778_v35  ;;  %949 = vst.msk [vmem:[%s1419_s28 + $0x28] sm:$0x1] %vm367_vm1, %v705_v36  ;;  %v779_v38 = vadd.f32 %v777_v26, %v1400_v44 }
 0x149   : > { %v784_v39 = vsel %vm780_vm9, %v778_v35, %v782_v37  ;;  %vm781_vm10 = vcmp.ge.f32.partialorder %v779_v38, 0.0  ;;  %v783_v40 = vmul.f32 0.2, %v779_v38 }
 0x14a   : > { %956 = vst.msk [vmem:[%s1419_s28 + $0x30] sm:$0xff] %vm365_vm2, %v784_v39 }
 0x14b   : > { %v785_v41 = vsel %vm781_vm10, %v779_v38, %v783_v40 }
 0x14c   : > { %957 = vst.msk [vmem:[%s1419_s28 + $0x38] sm:$0x1] %vm367_vm1, %v785_v41 }
 0x14d PF: > { %s17_s20 = sadd.s32 1, %s1114_s20   ;;  %s1471_s18 = smov %s1110_s19 }
 0x14e   : > { %p14_p4 = scmp.ge.s32.totalorder %s17_s20, 4   ;;  %s1472_s19 = smov %s1474_s22 }
 0x150   :  { %16 = sbr.rel (!%p14_p4) target bundleno = 6 (0x6), region = 101 }
 0x157   :  { %819 = vsyncpa [#allocation4], 1 }
 0x158   :  { %821 = vsyncpa [#allocation4 + $0x1], 1 }
 0x159   :  { %822 = vsyncpa [#allocation6], 1 }

</bundles_post_ra>
